<compile_context>
chip_gen: v7x
topology: tpu7x:2x2x1
jax: 0.10.0
libtpu: 0.0.40
codegen_flags: <defaults>
</compile_context>

<pallas_src>
import functools

import jax
import jax.numpy as jnp
from jax.experimental import pallas as pl
from jax.experimental.pallas import tpu as pltpu

_BN_EPS = 1e-5
_ACT_DTYPE = jnp.bfloat16            # inter-kernel activation storage dtype
_VMEM_LIMIT = 32 * 1024 * 1024       # explicit scoped-VMEM cap (v5e/v6e/v7x safe)


def _round_up(x, m):
    return (x + m - 1) // m * m


def _apply_act(v, act):
    if act == "relu":
        return jnp.maximum(v, 0.0)
    if act == "sigmoid":
        return jax.nn.sigmoid(v)
    return v


# ----------------------------------------------------------------------------
# index maps (module-level so kernel/compile cache keys stay stable)
# ----------------------------------------------------------------------------
def _im_mm_x(j, i):
    return (i, 0)


def _im_mm_w(j, i):
    return (0, j)


def _im_mm_col(j, i):
    return (0, j)


def _im_mm_out(j, i):
    return (i, j)


def _im_row(i):
    return (i, 0)


def _im_bcast(i):
    return (0, 0)


def _im_bcast3(i):
    return (0, 0, 0)


# ----------------------------------------------------------------------------
# Pallas kernels
# ----------------------------------------------------------------------------
def _mm_kernel(x_ref, w_ref, b_ref, o_ref, *, act):
    acc = jnp.dot(x_ref[...], w_ref[...], preferred_element_type=jnp.float32)
    o_ref[...] = _apply_act(acc + b_ref[...], act).astype(o_ref.dtype)


def _mm_stats_kernel(x_ref, w_ref, b_ref, o_ref, sum_ref, sq_ref, *, act):
    acc = jnp.dot(x_ref[...], w_ref[...], preferred_element_type=jnp.float32)
    y = _apply_act(acc + b_ref[...], act)
    o_ref[...] = y.astype(o_ref.dtype)

    @pl.when(pl.program_id(1) == 0)
    def _():
        sum_ref[...] = jnp.zeros_like(sum_ref)
        sq_ref[...] = jnp.zeros_like(sq_ref)

    sum_ref[...] += jnp.sum(y, axis=0, keepdims=True)
    sq_ref[...] += jnp.sum(y * y, axis=0, keepdims=True)


def _aff_kernel(x_ref, s_ref, b_ref, o_ref, *, act):
    y = _apply_act(x_ref[...].astype(jnp.float32) * s_ref[...] + b_ref[...], act)
    o_ref[...] = y.astype(o_ref.dtype)


def _aff_stats_kernel(x_ref, s_ref, b_ref, o_ref, sum_ref, sq_ref, *, act):
    y = _apply_act(x_ref[...].astype(jnp.float32) * s_ref[...] + b_ref[...], act)
    o_ref[...] = y.astype(o_ref.dtype)

    @pl.when(pl.program_id(0) == 0)
    def _():
        sum_ref[...] = jnp.zeros_like(sum_ref)
        sq_ref[...] = jnp.zeros_like(sq_ref)

    sum_ref[...] += jnp.sum(y, axis=0, keepdims=True)
    sq_ref[...] += jnp.sum(y * y, axis=0, keepdims=True)


def _fma_kernel(x_ref, s_ref, b_ref, r_ref, o_ref, *, inner_act, outer_act):
    t = _apply_act(x_ref[...].astype(jnp.float32) * s_ref[...] + b_ref[...],
                   inner_act)
    y = _apply_act(t + r_ref[...].astype(jnp.float32), outer_act)
    o_ref[...] = y.astype(o_ref.dtype)


def _fma_stats_kernel(x_ref, s_ref, b_ref, r_ref, o_ref, sum_ref, sq_ref, *,
                      inner_act, outer_act):
    t = _apply_act(x_ref[...].astype(jnp.float32) * s_ref[...] + b_ref[...],
                   inner_act)
    y = _apply_act(t + r_ref[...].astype(jnp.float32), outer_act)
    o_ref[...] = y.astype(o_ref.dtype)

    @pl.when(pl.program_id(0) == 0)
    def _():
        sum_ref[...] = jnp.zeros_like(sum_ref)
        sq_ref[...] = jnp.zeros_like(sq_ref)

    sum_ref[...] += jnp.sum(y, axis=0, keepdims=True)
    sq_ref[...] += jnp.sum(y * y, axis=0, keepdims=True)


def _se_res_kernel(y_ref, s_ref, b_ref, z_ref, r_ref, sr_ref, br_ref, o_ref):
    # out = relu( (bn3(conv3)) * se_gate + bn_down(residual) )
    h = (y_ref[...].astype(jnp.float32) * s_ref[...] + b_ref[...]) * z_ref[...]
    res = r_ref[...].astype(jnp.float32) * sr_ref[...] + br_ref[...]
    o_ref[...] = jnp.maximum(h + res, 0.0).astype(o_ref.dtype)


# keep kernel-function identity stable so compilations are cached across calls
_MM_KERNELS = {a: functools.partial(_mm_kernel, act=a)
               for a in ("none", "relu", "sigmoid")}
_MM_STATS_KERNELS = {"none": functools.partial(_mm_stats_kernel, act="none")}
_AFF_KERNELS = {a: functools.partial(_aff_kernel, act=a)
                for a in ("none", "relu")}
_AFF_STATS_KERNELS = {a: functools.partial(_aff_stats_kernel, act=a)
                      for a in ("none", "relu")}
_FMA_KERNELS = {(ia, oa): functools.partial(_fma_kernel, inner_act=ia, outer_act=oa)
                for ia in ("none", "relu") for oa in ("none", "relu")}
_FMA_STATS_KERNELS = {(ia, oa): functools.partial(_fma_stats_kernel,
                                                  inner_act=ia, outer_act=oa)
                      for ia in ("none", "relu") for oa in ("none", "relu")}


# ----------------------------------------------------------------------------
# Pallas wrappers
# ----------------------------------------------------------------------------
def matmul_fused(x, w, bias=None, act="none", out_dtype=_ACT_DTYPE,
                 with_stats=False):
    """out = act(x @ w + bias)  (bf16 MXU, f32 accumulate)
    Optionally also returns per-output-channel (sum, sumsq, count) of `out`."""
    M, K = x.shape
    N = w.shape[1]
    if with_stats:
        # padded rows/cols must contribute exact zeros to the statistics
        assert bias is None and act == "none"

    # lane-dense output / less MXU column masking: pad N to a multiple of 128
    Np = _round_up(N, 128)
    TN = Np if Np <= 512 else 512
    Np = _round_up(Np, TN)
    # row tiling: cap at 512, pad rows to the tile (sublane aligned)
    if M > 512:
        TM = 512
        Mp = _round_up(M, TM)
    else:
        Mp = _round_up(M, 8)
        TM = Mp

    xb = x.astype(jnp.bfloat16)
    if Mp != M:
        xb = jnp.pad(xb, ((0, Mp - M), (0, 0)))
    wb = w.astype(jnp.bfloat16)
    if Np != N:
        wb = jnp.pad(wb, ((0, 0), (0, Np - N)))
    b = (jnp.zeros((N,), jnp.float32) if bias is None
         else bias.astype(jnp.float32))
    if Np != N:
        b = jnp.pad(b, (0, Np - N))
    b = b.reshape(1, Np)

    grid = (Np // TN, Mp // TM)
    x_spec = pl.BlockSpec((TM, K), _im_mm_x)
    w_spec = pl.BlockSpec((K, TN), _im_mm_w)
    b_spec = pl.BlockSpec((1, TN), _im_mm_col)
    o_spec = pl.BlockSpec((TM, TN), _im_mm_out)

    if with_stats:
        out = pl.pallas_call(
            _MM_STATS_KERNELS[act],
            out_shape=(jax.ShapeDtypeStruct((Mp, Np), out_dtype),
                       jax.ShapeDtypeStruct((1, Np), jnp.float32),
                       jax.ShapeDtypeStruct((1, Np), jnp.float32)),
            grid=grid,
            in_specs=[x_spec, w_spec, b_spec],
            out_specs=(o_spec,
                       pl.BlockSpec((1, TN), _im_mm_col),
                       pl.BlockSpec((1, TN), _im_mm_col)),
            compiler_params=pltpu.CompilerParams(
                dimension_semantics=("parallel", "arbitrary"),
                vmem_limit_bytes=_VMEM_LIMIT),
        )(xb, wb, b)
        y, sm, sq = out
        return y[:M, :N], (sm[0, :N], sq[0, :N], M)

    y = pl.pallas_call(
        _MM_KERNELS[act],
        out_shape=jax.ShapeDtypeStruct((Mp, Np), out_dtype),
        grid=grid,
        in_specs=[x_spec, w_spec, b_spec],
        out_specs=o_spec,
        compiler_params=pltpu.CompilerParams(
            dimension_semantics=("parallel", "parallel"),
            vmem_limit_bytes=_VMEM_LIMIT),
    )(xb, wb, b)
    return y[:M, :N]


def _packed_layout(M, C):
    """Pack several sub-128-channel rows per 128-lane vreg row (lane-dense)."""
    rep = 1
    if C < 128 and 128 % C == 0 and M % (128 // C) == 0:
        rep = 128 // C
    R = M // rep
    L = C * rep
    TR = R
    for t in (512, 256, 128, 64, 32, 16, 8):
        if R % t == 0:
            TR = t
            break
    return R, L, rep, TR


def affine_act2d(x2, scale, shift, act="none", with_stats=False,
                 out_dtype=_ACT_DTYPE):
    """out = act(x * scale + shift), per-channel affine, lane-dense packing."""
    M, C = x2.shape
    R, L, rep, TR = _packed_layout(M, C)
    xr = x2.reshape(R, L)
    s = jnp.tile(scale.astype(jnp.float32), rep).reshape(1, L)
    b = jnp.tile(shift.astype(jnp.float32), rep).reshape(1, L)
    grid = (R // TR,)
    in_specs = [pl.BlockSpec((TR, L), _im_row),
                pl.BlockSpec((1, L), _im_bcast),
                pl.BlockSpec((1, L), _im_bcast)]
    o_spec = pl.BlockSpec((TR, L), _im_row)

    if with_stats:
        y, sm, sq = pl.pallas_call(
            _AFF_STATS_KERNELS[act],
            out_shape=(jax.ShapeDtypeStruct((R, L), out_dtype),
                       jax.ShapeDtypeStruct((1, L), jnp.float32),
                       jax.ShapeDtypeStruct((1, L), jnp.float32)),
            grid=grid, in_specs=in_specs,
            out_specs=(o_spec,
                       pl.BlockSpec((1, L), _im_bcast),
                       pl.BlockSpec((1, L), _im_bcast)),
            compiler_params=pltpu.CompilerParams(
                dimension_semantics=("arbitrary",),
                vmem_limit_bytes=_VMEM_LIMIT),
        )(xr, s, b)
        stats = (sm.reshape(rep, C).sum(0), sq.reshape(rep, C).sum(0), M)
        return y.reshape(M, C), stats

    y = pl.pallas_call(
        _AFF_KERNELS[act],
        out_shape=jax.ShapeDtypeStruct((R, L), out_dtype),
        grid=grid, in_specs=in_specs, out_specs=o_spec,
        compiler_params=pltpu.CompilerParams(
            dimension_semantics=("parallel",), vmem_limit_bytes=_VMEM_LIMIT),
    )(xr, s, b)
    return y.reshape(M, C)


def affine_add2d(x2, scale, shift, r2, inner_act, outer_act, with_stats=False,
                 out_dtype=_ACT_DTYPE):
    """out = outer_act(inner_act(x*scale+shift) + r), lane-dense packing."""
    M, C = x2.shape
    R, L, rep, TR = _packed_layout(M, C)
    xr = x2.reshape(R, L)
    rr = r2.reshape(R, L)
    s = jnp.tile(scale.astype(jnp.float32), rep).reshape(1, L)
    b = jnp.tile(shift.astype(jnp.float32), rep).reshape(1, L)
    grid = (R // TR,)
    in_specs = [pl.BlockSpec((TR, L), _im_row),
                pl.BlockSpec((1, L), _im_bcast),
                pl.BlockSpec((1, L), _im_bcast),
                pl.BlockSpec((TR, L), _im_row)]
    o_spec = pl.BlockSpec((TR, L), _im_row)
    key = (inner_act, outer_act)

    if with_stats:
        y, sm, sq = pl.pallas_call(
            _FMA_STATS_KERNELS[key],
            out_shape=(jax.ShapeDtypeStruct((R, L), out_dtype),
                       jax.ShapeDtypeStruct((1, L), jnp.float32),
                       jax.ShapeDtypeStruct((1, L), jnp.float32)),
            grid=grid, in_specs=in_specs,
            out_specs=(o_spec,
                       pl.BlockSpec((1, L), _im_bcast),
                       pl.BlockSpec((1, L), _im_bcast)),
            compiler_params=pltpu.CompilerParams(
                dimension_semantics=("arbitrary",),
                vmem_limit_bytes=_VMEM_LIMIT),
        )(xr, s, b, rr)
        stats = (sm.reshape(rep, C).sum(0), sq.reshape(rep, C).sum(0), M)
        return y.reshape(M, C), stats

    y = pl.pallas_call(
        _FMA_KERNELS[key],
        out_shape=jax.ShapeDtypeStruct((R, L), out_dtype),
        grid=grid, in_specs=in_specs, out_specs=o_spec,
        compiler_params=pltpu.CompilerParams(
            dimension_semantics=("parallel",), vmem_limit_bytes=_VMEM_LIMIT),
    )(xr, s, b, rr)
    return y.reshape(M, C)


def se_residual(y3, s3, b3, z, r, sr, br):
    """out = relu((y3*s3+b3) * z + (r*sr+br)) with z broadcast over H*W."""
    N, H, W, C = y3.shape
    HW = H * W
    spec_full = pl.BlockSpec((N, HW, C), _im_bcast3)
    spec_vec = pl.BlockSpec((1, 1, C), _im_bcast3)
    spec_z = pl.BlockSpec((N, 1, C), _im_bcast3)
    out = pl.pallas_call(
        _se_res_kernel,
        out_shape=jax.ShapeDtypeStruct((N, HW, C), _ACT_DTYPE),
        grid=(1,),
        in_specs=[spec_full, spec_vec, spec_vec, spec_z,
                  spec_full, spec_vec, spec_vec],
        out_specs=spec_full,
        compiler_params=pltpu.CompilerParams(
            dimension_semantics=("arbitrary",), vmem_limit_bytes=_VMEM_LIMIT),
    )(y3.reshape(N, HW, C),
      s3.astype(jnp.float32).reshape(1, 1, C),
      b3.astype(jnp.float32).reshape(1, 1, C),
      z.astype(jnp.float32).reshape(N, 1, C),
      r.reshape(N, HW, C),
      sr.astype(jnp.float32).reshape(1, 1, C),
      br.astype(jnp.float32).reshape(1, 1, C))
    return out.reshape(N, H, W, C)


# ----------------------------------------------------------------------------
# JAX glue: im2col, BN finalize, resizes
# ----------------------------------------------------------------------------
def _im2col(x, kh, kw, stride, pad):
    x = x.astype(_ACT_DTYPE)
    N, H, W, C = x.shape
    xp = jnp.pad(x, ((0, 0), (pad, pad), (pad, pad), (0, 0)))
    Ho = (H + 2 * pad - kh) // stride + 1
    Wo = (W + 2 * pad - kw) // stride + 1
    cols = []
    for i in range(kh):
        for j in range(kw):
            cols.append(xp[:, i:i + stride * Ho:stride, j:j + stride * Wo:stride, :])
    patches = jnp.concatenate(cols, axis=-1)
    return patches.reshape(N * Ho * Wo, kh * kw * C), (N, Ho, Wo)


def conv2d(x, w, stride=1, pad=0, bias=None, act="none", with_stats=False,
           out_dtype=_ACT_DTYPE):
    """NHWC conv via (bf16) im2col + fused Pallas MXU matmul.
    w: (kh, kw, cin, cout).  Optionally returns per-channel output stats."""
    kh, kw, cin, cout = w.shape
    if kh == 1 and kw == 1 and pad == 0 and stride == 1:
        N, H, W, _ = x.shape
        cols, (Ho, Wo) = x.reshape(N * H * W, cin), (H, W)
    else:
        cols, (N, Ho, Wo) = _im2col(x, kh, kw, stride, pad)
    res = matmul_fused(cols, w.reshape(kh * kw * cin, cout), bias, act,
                       out_dtype, with_stats)
    if with_stats:
        y, stats = res
        return y.reshape(N, Ho, Wo, cout), stats
    return res.reshape(N, Ho, Wo, cout)


def _bn_scale_shift(stats, gamma, beta):
    """Training-mode BatchNorm affine from fused per-channel (sum, sumsq)."""
    s, q, cnt = stats
    mean = s / cnt
    var = jnp.maximum(q / cnt - mean * mean, 0.0)     # biased var, like torch
    scale = gamma / jnp.sqrt(var + _BN_EPS)
    shift = beta - mean * scale
    return scale, shift


def _glue_stats(x):
    # Fallback for a stage input that bypasses every Pallas producer
    # (not hit for this config).
    C = x.shape[-1]
    x2 = x.reshape(-1, C).astype(jnp.float32)
    return jnp.sum(x2, axis=0), jnp.sum(x2 * x2, axis=0), x2.shape[0]


def affine_act_nhwc(x, scale, shift, act="none", with_stats=False):
    N, H, W, C = x.shape
    res = affine_act2d(x.reshape(-1, C), scale, shift, act, with_stats)
    if with_stats:
        y, st = res
        return y.reshape(N, H, W, C), st
    return res.reshape(N, H, W, C)


def bn_act_nhwc(x, stats, gamma, beta, act="relu", with_stats=False):
    s, b = _bn_scale_shift(stats, gamma, beta)
    return affine_act_nhwc(x, s, b, act, with_stats)


def affine_add_nhwc(x, scale, shift, r, inner_act, outer_act, with_stats=False):
    N, H, W, C = x.shape
    res = affine_add2d(x.reshape(-1, C), scale, shift, r.reshape(-1, C),
                       inner_act, outer_act, with_stats)
    if with_stats:
        y, st = res
        return y.reshape(N, H, W, C), st
    return res.reshape(N, H, W, C)


def add_residual_nhwc(a, b):
    C = a.shape[-1]
    return affine_add_nhwc(a, jnp.ones((C,), jnp.float32),
                           jnp.zeros((C,), jnp.float32), b, "none", "none")


def upsample_nearest(x, s):
    return jnp.repeat(jnp.repeat(x, s, axis=1), s, axis=2)


def upsample_bilinear_align_corners(x, s):
    """F.interpolate(..., mode='bilinear', align_corners=True) on NHWC."""
    N, H, W, C = x.shape
    Ho, Wo = H * s, W * s
    ys = jnp.linspace(0.0, H - 1.0, Ho)
    xs = jnp.linspace(0.0, W - 1.0, Wo)
    y0 = jnp.floor(ys).astype(jnp.int32)
    x0 = jnp.floor(xs).astype(jnp.int32)
    y1 = jnp.minimum(y0 + 1, H - 1)
    x1 = jnp.minimum(x0 + 1, W - 1)
    wy = (ys - y0.astype(jnp.float32))[None, :, None, None]
    wx = (xs - x0.astype(jnp.float32))[None, None, :, None]
    g00 = x[:, y0][:, :, x0]
    g01 = x[:, y0][:, :, x1]
    g10 = x[:, y1][:, :, x0]
    g11 = x[:, y1][:, :, x1]
    top = g00 * (1.0 - wx) + g01 * wx
    bot = g10 * (1.0 - wx) + g11 * wx
    return top * (1.0 - wy) + bot * wy


# ----------------------------------------------------------------------------
# Parameter construction (deterministic, matches module __init__ shapes)
# ----------------------------------------------------------------------------
class KeyGen:
    def __init__(self, key):
        self._key = key

    def __call__(self):
        self._key, k = jax.random.split(self._key)
        return k


def _kaiming_conv(key, kh, kw, cin, cout):
    fan_in = kh * kw * cin
    bound = (6.0 / fan_in) ** 0.5        # kaiming_uniform, relu gain
    return jax.random.uniform(key, (kh, kw, cin, cout), jnp.float32, -bound, bound)


def _xavier(key, cin, cout):
    bound = (6.0 / (cin + cout)) ** 0.5
    return jax.random.uniform(key, (cin, cout), jnp.float32, -bound, bound)


def _bn(c):
    return (jnp.ones((c,), jnp.float32), jnp.zeros((c,), jnp.float32))


def build_params(config, kg):
    cin = config["in_channels"]
    ncls = config["out_channels"]
    channels = config["channels"]
    nb = config["n_blocks"]
    if isinstance(nb, int):
        nb = [nb] * 4
    expansion = 4
    c_s1 = 64
    P = {}
    P["conv1"] = _kaiming_conv(kg(), 3, 3, cin, c_s1)
    P["bn1"] = _bn(c_s1)
    P["conv2"] = _kaiming_conv(kg(), 3, 3, c_s1, c_s1)
    P["bn2"] = _bn(c_s1)

    def se_block(inplanes, planes, reduction, with_down):
        p = {
            "w1": _kaiming_conv(kg(), 1, 1, inplanes, planes), "bn1": _bn(planes),
            "w2": _kaiming_conv(kg(), 3, 3, planes, planes),   "bn2": _bn(planes),
            "w3": _kaiming_conv(kg(), 1, 1, planes, planes * expansion),
            "bn3": _bn(planes * expansion),
        }
        c = planes * expansion
        mid = c // reduction
        p["fc1_w"] = _xavier(kg(), c, mid)
        p["fc1_b"] = jnp.zeros((mid,), jnp.float32)
        p["fc2_w"] = _xavier(kg(), mid, c)
        p["fc2_b"] = jnp.zeros((c,), jnp.float32)
        if with_down:
            p["dw"] = _kaiming_conv(kg(), 1, 1, inplanes, c)
            p["dbn"] = _bn(c)
        else:
            p["dw"] = None
        return p

    layer1 = []
    inpl = c_s1
    for b in range(nb[0]):
        layer1.append(se_block(inpl, c_s1, 16,
                               with_down=(b == 0 and inpl != c_s1 * expansion)))
        inpl = c_s1 * expansion
    P["layer1"] = layer1

    def transition(pre, cur):
        t = []
        npre = len(pre)
        for i in range(len(cur)):
            if i < npre:
                if cur[i] != pre[i]:
                    t.append([{"w": _kaiming_conv(kg(), 3, 3, pre[i], cur[i]),
                               "bn": _bn(cur[i]), "stride": 1}])
                else:
                    t.append(None)
            else:
                steps = []
                inch = pre[-1]
                for j in range(i + 1 - npre):
                    outch = cur[i] if j == i - npre else inch
                    steps.append({"w": _kaiming_conv(kg(), 3, 3, inch, outch),
                                  "bn": _bn(outch), "stride": 2})
                    inch = outch
                t.append(steps)
        return t

    def hr_module(chs):
        n = len(chs)
        branches = []
        for c in chs:
            layers = []
            ci = c
            for _ in range(2):                       # HighResBlock kernels=(3,3)
                layers.append({"bn": _bn(ci),
                               "w": _kaiming_conv(kg(), 3, 3, ci, c)})
                ci = c
            branches.append(layers)
        fuse = []
        for i in range(n):
            row = []
            for j in range(n):
                if j > i:
                    row.append({"type": "up",
                                "w": _kaiming_conv(kg(), 1, 1, chs[j], chs[i]),
                                "bn": _bn(chs[i]), "scale": 2 ** (j - i)})
                elif j < i:
                    steps = []
                    ci = chs[j]
                    for k in range(i - j):
                        co = chs[i] if k == i - j - 1 else ci
                        steps.append({"w": _kaiming_conv(kg(), 3, 3, ci, co),
                                      "bn": _bn(co)})
                        ci = co
                    row.append({"type": "down", "steps": steps})
                else:
                    row.append(None)
            fuse.append(row)
        return {"nb": n, "branches": branches, "fuse": fuse}

    pre = [c_s1 * expansion]
    cur2 = channels[:2]
    P["trans1"] = transition(pre, cur2)
    P["stage2"] = hr_module(cur2)
    cur3 = channels[:3]
    P["trans2"] = transition(cur2, cur3)
    P["stage3"] = hr_module(cur3)
    cur4 = channels
    P["trans3"] = transition(cur3, cur4)
    P["stage4"] = hr_module(cur4)
    P["final_w"] = _kaiming_conv(kg(), 1, 1, cur4[0], ncls)
    P["final_b"] = jnp.zeros((ncls,), jnp.float32)
    return P


# ----------------------------------------------------------------------------
# Forward pass
# ----------------------------------------------------------------------------
def se_bottleneck_fwd(x, p):
    # main path: 1x1 / 3x3 / 1x1 convs, BN stats fused into each conv kernel
    y1, st1 = conv2d(x, p["w1"], 1, 0, with_stats=True)
    a1 = bn_act_nhwc(y1, st1, p["bn1"][0], p["bn1"][1], "relu")
    y2, st2 = conv2d(a1, p["w2"], 1, 1, with_stats=True)
    a2 = bn_act_nhwc(y2, st2, p["bn2"][0], p["bn2"][1], "relu")
    y3, st3 = conv2d(a2, p["w3"], 1, 0, with_stats=True)
    s3, b3 = _bn_scale_shift(st3, p["bn3"][0], p["bn3"][1])

    # squeeze-excite gate: z = sigmoid(fc2(relu(fc1(avgpool(bn3_out)))))
    N, H, W, C = y3.shape
    mean_y3 = jnp.mean(y3.reshape(N, H * W, C).astype(jnp.float32), axis=1)
    z_in = mean_y3 * s3[None, :] + b3[None, :]
    z = matmul_fused(z_in, p["fc1_w"], p["fc1_b"], "relu", out_dtype=jnp.float32)
    z = matmul_fused(z, p["fc2_w"], p["fc2_b"], "sigmoid", out_dtype=jnp.float32)

    # residual path (1x1 downsample conv + BN, affine fused into SE kernel)
    if p["dw"] is not None:
        r, std = conv2d(x, p["dw"], 1, 0, with_stats=True)
        sr, br = _bn_scale_shift(std, p["dbn"][0], p["dbn"][1])
    else:
        r = x
        sr = jnp.ones((C,), jnp.float32)
        br = jnp.zeros((C,), jnp.float32)

    # fused: relu(bn3(conv3) * z + bn_down(residual))
    return se_residual(y3, s3, b3, z, r, sr, br)


def highres_block_fwd(x, x_stats, layers):
    """MONAI HighResBlock: 2x [BN -> ReLU -> Conv3x3] + identity residual."""
    h, st = x, x_stats
    for idx, lyr in enumerate(layers):
        a = bn_act_nhwc(h, st, lyr["bn"][0], lyr["bn"][1], "relu")
        if idx + 1 < len(layers):
            h, st = conv2d(a, lyr["w"], 1, 1, with_stats=True)
        else:
            h = conv2d(a, lyr["w"], 1, 1)
    return add_residual_nhwc(h, x)   # 'project' residual is identity here


def _fuse_term(entry, xj):
    """Return (raw term tensor, BN scale, BN shift, inner activation).
    The BN affine (+ ReLU for down-chains) is fused into the add kernel."""
    if entry["type"] == "up":
        y, st = conv2d(xj, entry["w"], 1, 0, with_stats=True)
        s, b = _bn_scale_shift(st, *entry["bn"])
        # per-channel affine commutes with nearest upsample -> apply in the add
        return upsample_nearest(y, entry["scale"]), s, b, "none"
    steps = entry["steps"]
    y = xj
    for k, stp in enumerate(steps):
        yc, stc = conv2d(y, stp["w"], 2, 1, with_stats=True)
        s, b = _bn_scale_shift(stc, *stp["bn"])
        if k + 1 == len(steps):
            return yc, s, b, "relu"
        y = affine_act_nhwc(yc, s, b, "relu")
    raise AssertionError("empty down-fuse chain")


def highres_module_fwd(xs, p):
    """xs: list of (tensor, stats).  Returns list of (tensor, stats)."""
    n = p["nb"]
    assert n >= 2
    blocks = [highres_block_fwd(t, st, p["branches"][i])
              for i, (t, st) in enumerate(xs)]
    outs = []
    for i in range(n):
        running = blocks[i]                    # identity (j == i) term
        others = [j for j in range(n) if j != i]
        out_i = None
        for idx, j in enumerate(others):
            term, s, b, inner = _fuse_term(p["fuse"][i][j], blocks[j])
            last = idx + 1 == len(others)
            if last:                           # final add carries the ReLU + stats
                out_i = affine_add_nhwc(term, s, b, running, inner, "relu",
                                        with_stats=True)
            else:
                running = affine_add_nhwc(term, s, b, running, inner, "none")
        outs.append(out_i)
    return outs


def apply_transition(entry, x):
    """conv3x3 -> BN -> ReLU (-> Dropout p=0) chain; returns (tensor, stats)."""
    y = x
    for k, stp in enumerate(entry):
        yc, stc = conv2d(y, stp["w"], stp["stride"], 1, with_stats=True)
        s, b = _bn_scale_shift(stc, *stp["bn"])
        if k + 1 == len(entry):
            return affine_act_nhwc(yc, s, b, "relu", with_stats=True)
        y = affine_act_nhwc(yc, s, b, "relu")


def hrnet_forward(x_nchw, P):
    x = jnp.transpose(x_nchw.astype(jnp.float32), (0, 2, 3, 1)).astype(_ACT_DTYPE)
    y, st = conv2d(x, P["conv1"], 2, 1, with_stats=True)
    x = bn_act_nhwc(y, st, P["bn1"][0], P["bn1"][1], "relu")
    # dropout1: p = 0.0 -> identity
    y, st = conv2d(x, P["conv2"], 2, 1, with_stats=True)
    x = bn_act_nhwc(y, st, P["bn2"][0], P["bn2"][1], "relu")
    for blk in P["layer1"]:
        x = se_bottleneck_fwd(x, blk)
    x = upsample_bilinear_align_corners(x.astype(jnp.float32), 4).astype(_ACT_DTYPE)

    xs = []
    for t in P["trans1"]:
        if t is not None:
            xs.append(apply_transition(t, x))
        else:
            xs.append((x, _glue_stats(x)))
    ys = highres_module_fwd(xs, P["stage2"])

    # NOTE: matches the PyTorch spec, which applies non-None transition2/3
    # entries to y_list[-1] (and passes y_list[i] through otherwise).
    xs = []
    for i, t in enumerate(P["trans2"]):
        xs.append(apply_transition(t, ys[-1][0]) if t is not None else ys[i])
    ys = highres_module_fwd(xs, P["stage3"])

    xs = []
    for i, t in enumerate(P["trans3"]):
        xs.append(apply_transition(t, ys[-1][0]) if t is not None else ys[i])
    ys = highres_module_fwd(xs, P["stage4"])

    out = conv2d(ys[0][0], P["final_w"], 1, 0, bias=P["final_b"],
                 out_dtype=jnp.float32)          # final 1x1 (+ Dropout p=0)
    return jnp.transpose(out, (0, 3, 1, 2))      # NHWC -> NCHW


# ----------------------------------------------------------------------------
if __name__ == "__main__":
    config = {
        "spatial_dims": 2,
        "in_channels": 1,
        "out_channels": 4,              # num landmark classes
        "channels": [16, 32, 64, 128],  # 4-branch HRNet widths (small)
        "n_blocks": 1,
        "dropout": 0.0,
    }
    key = jax.random.PRNGKey(0)
    pkey, xkey = jax.random.split(key)
    params = build_params(config, KeyGen(pkey))
    x = jax.random.normal(xkey, (2, config["in_channels"], 16, 16), jnp.float32)

    out = hrnet_forward(x, params)
    out = jax.block_until_ready(out)
    assert out.shape == (2, config["out_channels"], 16, 16), out.shape
    assert bool(jnp.all(jnp.isfinite(out)))
    print("KERNEL_OK")
</pallas_src>

<mosaic_0001>
module attributes {stable_mosaic.version = 11 : i64} {
  func.func @_mm_stats_kernel(%arg0: i32, %arg1: i32, %arg2: memref<128x9xbf16, #tpu.memory_space<vmem>>, %arg3: memref<9x128xbf16, #tpu.memory_space<vmem>>, %arg4: memref<1x128xf32, #tpu.memory_space<vmem>>, %arg5: memref<128x128xbf16, #tpu.memory_space<vmem>>, %arg6: memref<1x128xf32, #tpu.memory_space<vmem>>, %arg7: memref<1x128xf32, #tpu.memory_space<vmem>>) attributes {dimension_semantics = [#tpu.dimension_semantics<parallel>, #tpu.dimension_semantics<arbitrary>], iteration_bounds = array<i64: 1, 1>, scalar_prefetch = 0 : i64, scratch_operands = 0 : i64, tpu.core_type = #tpu.core_type<tc>, window_params = [{transform_indices = @transform_0, window_bounds = array<i64: 128, 9>}, {transform_indices = @transform_1, window_bounds = array<i64: 9, 128>}, {transform_indices = @transform_2, window_bounds = array<i64: 1, 128>}, {transform_indices = @transform_3, window_bounds = array<i64: 128, 128>}, {transform_indices = @transform_4, window_bounds = array<i64: 1, 128>}, {transform_indices = @transform_5, window_bounds = array<i64: 1, 128>}]} {
    %c0 = arith.constant 0 : index
    %c0_0 = arith.constant 0 : index
    %0 = vector.load %arg2[%c0, %c0_0] : memref<128x9xbf16, #tpu.memory_space<vmem>>, vector<128x9xbf16>
    %c0_1 = arith.constant 0 : index
    %c0_2 = arith.constant 0 : index
    %1 = vector.load %arg3[%c0_1, %c0_2] : memref<9x128xbf16, #tpu.memory_space<vmem>>, vector<9x128xbf16>
    %cst = arith.constant dense<0.000000e+00> : vector<128x128xf32>
    %2 = tpu.matmul %0, %1, %cst {dimension_numbers = #tpu.dot_dimension_numbers<[1], [0], [0], [1], [0, 0, 1, 1], [], []>} : vector<128x9xbf16>, vector<9x128xbf16>, vector<128x128xf32> -> vector<128x128xf32>
    %c0_3 = arith.constant 0 : index
    %c0_4 = arith.constant 0 : index
    %3 = vector.load %arg4[%c0_3, %c0_4] : memref<1x128xf32, #tpu.memory_space<vmem>>, vector<1x128xf32>
    %4 = vector.broadcast %3 : vector<1x128xf32> to vector<128x128xf32>
    %5 = arith.addf %2, %4 : vector<128x128xf32>
    %6 = arith.truncf %5 : vector<128x128xf32> to vector<128x128xbf16>
    %c0_5 = arith.constant 0 : index
    %c0_6 = arith.constant 0 : index
    %7 = vector.load %arg5[%c0_5, %c0_6] : memref<128x128xbf16, #tpu.memory_space<vmem>>, vector<128x128xbf16>
    tpu.vector_store %arg5[%c0_5, %c0_6], %6 {strides = array<i32>} : memref<128x128xbf16, #tpu.memory_space<vmem>>, vector<128x128xbf16>,
    %c0_i32 = arith.constant 0 : i32
    %8 = arith.cmpi eq, %arg1, %c0_i32 : i32
    %9 = arith.extui %8 : i1 to i32
    %c0_i32_7 = arith.constant 0 : i32
    %10 = arith.cmpi ne, %9, %c0_i32_7 : i32
    scf.if %10 {
      %cst_18 = arith.constant 0.000000e+00 : f32
      %22 = vector.broadcast %cst_18 : f32 to vector<1x128xf32>
      %c0_19 = arith.constant 0 : index
      %c0_20 = arith.constant 0 : index
      %23 = vector.load %arg6[%c0_19, %c0_20] : memref<1x128xf32, #tpu.memory_space<vmem>>, vector<1x128xf32>
      tpu.vector_store %arg6[%c0_19, %c0_20], %22 {strides = array<i32>} : memref<1x128xf32, #tpu.memory_space<vmem>>, vector<1x128xf32>,
      %cst_21 = arith.constant 0.000000e+00 : f32
      %24 = vector.broadcast %cst_21 : f32 to vector<1x128xf32>
      %c0_22 = arith.constant 0 : index
      %c0_23 = arith.constant 0 : index
      %25 = vector.load %arg7[%c0_22, %c0_23] : memref<1x128xf32, #tpu.memory_space<vmem>>, vector<1x128xf32>
      tpu.vector_store %arg7[%c0_22, %c0_23], %24 {strides = array<i32>} : memref<1x128xf32, #tpu.memory_space<vmem>>, vector<1x128xf32>,
    } else {
    }
    %c0_8 = arith.constant 0 : index
    %c0_9 = arith.constant 0 : index
    %11 = vector.load %arg6[%c0_8, %c0_9] : memref<1x128xf32, #tpu.memory_space<vmem>>, vector<1x128xf32>
    %cst_10 = arith.constant dense<0.000000e+00> : vector<128xf32>
    %12 = vector.multi_reduction <add>, %5, %cst_10 [0] : vector<128x128xf32> to vector<128xf32>
    %13 = vector.shape_cast %12 : vector<128xf32> to vector<1x128xf32>
    %14 = arith.addf %11, %13 : vector<1x128xf32>
    %c0_11 = arith.constant 0 : index
    %c0_12 = arith.constant 0 : index
    %15 = vector.load %arg6[%c0_11, %c0_12] : memref<1x128xf32, #tpu.memory_space<vmem>>, vector<1x128xf32>
    tpu.vector_store %arg6[%c0_11, %c0_12], %14 {strides = array<i32>} : memref<1x128xf32, #tpu.memory_space<vmem>>, vector<1x128xf32>,
    %c0_13 = arith.constant 0 : index
    %c0_14 = arith.constant 0 : index
    %16 = vector.load %arg7[%c0_13, %c0_14] : memref<1x128xf32, #tpu.memory_space<vmem>>, vector<1x128xf32>
    %17 = arith.mulf %5, %5 : vector<128x128xf32>
    %cst_15 = arith.constant dense<0.000000e+00> : vector<128xf32>
    %18 = vector.multi_reduction <add>, %17, %cst_15 [0] : vector<128x128xf32> to vector<128xf32>
    %19 = vector.shape_cast %18 : vector<128xf32> to vector<1x128xf32>
    %20 = arith.addf %16, %19 : vector<1x128xf32>
    %c0_16 = arith.constant 0 : index
    %c0_17 = arith.constant 0 : index
    %21 = vector.load %arg7[%c0_16, %c0_17] : memref<1x128xf32, #tpu.memory_space<vmem>>, vector<1x128xf32>
    tpu.vector_store %arg7[%c0_16, %c0_17], %20 {strides = array<i32>} : memref<1x128xf32, #tpu.memory_space<vmem>>, vector<1x128xf32>,
    return
  }
  func.func @transform_0(%arg0: i32, %arg1: i32) -> (i32, i32) {
    %c0_i32 = arith.constant 0 : i32
    %c0_i32_0 = arith.constant 0 : i32
    return %arg1, %c0_i32 : i32, i32
  }
  func.func @transform_1(%arg0: i32, %arg1: i32) -> (i32, i32) {
    %c0_i32 = arith.constant 0 : i32
    %c0_i32_0 = arith.constant 0 : i32
    return %c0_i32, %arg0 : i32, i32
  }
  func.func @transform_2(%arg0: i32, %arg1: i32) -> (i32, i32) {
    %c0_i32 = arith.constant 0 : i32
    %c0_i32_0 = arith.constant 0 : i32
    return %c0_i32, %arg0 : i32, i32
  }
  func.func @transform_3(%arg0: i32, %arg1: i32) -> (i32, i32) {
    %c0_i32 = arith.constant 0 : i32
    return %arg1, %arg0 : i32, i32
  }
  func.func @transform_4(%arg0: i32, %arg1: i32) -> (i32, i32) {
    %c0_i32 = arith.constant 0 : i32
    %c0_i32_0 = arith.constant 0 : i32
    return %c0_i32, %arg0 : i32, i32
  }
  func.func @transform_5(%arg0: i32, %arg1: i32) -> (i32, i32) {
    %c0_i32 = arith.constant 0 : i32
    %c0_i32_0 = arith.constant 0 : i32
    return %c0_i32, %arg0 : i32, i32
  }
}

</mosaic_0001>

<bundles_post_ra>
// kernel: tpu_custom_call.1
= control target key start
LH: loop header
LB: loop body
LE: loop exit
PB: predicated region body
PF: predicated region fallthrough
CT: control target
= control target key end

     0   :  { %11 = vsyncpa [#allocation3], 0  ;;  %vm115_vm0 = vcmask 1043456   ;;  %vm116_vm1 = vcmask 1044480   ;;  %v624_v2 = vmov 65535   ;;  %vm90_vm2 = vcmask 72704   ;;  %s779_s0 = inlined_call_operand.vmem [shape: bf16[128,9], index: 0, kind: input, shape index: {}]   ;;  %s780_s1 = inlined_call_operand.vmem [shape: bf16[9,128], index: 1, kind: input, shape index: {}]   ;;  %s781_s2 = inlined_call_operand.vmem [shape: f32[1,128], index: 2, kind: input, shape index: {}]   ;;  %s782_s3 = inlined_call_operand.hbm [shape: bf16[128,128], index: 3, kind: output, shape index: {0}]   ;;  %s783_s4 = inlined_call_operand.hbm [shape: f32[1,128], index: 4, kind: output, shape index: {1}]   ;;  %s784_s5 = inlined_call_operand.hbm [shape: f32[1,128], index: 5, kind: output, shape index: {2}]  }
   0x1   :  { %v545_v0 = vld [vmem:[%s780_s1] sm:$0x1f]   ;;  %v117_v3 = vsel %vm115_vm0, 4294967295, %v624_v2  ;;  %v547_v6 = vld [vmem:[%s779_s0 + $0x8] sm:$0xff]   ;;  %v548_v7 = vld [vmem:[%s779_s0 + $0x10] sm:$0xff]  }
   0x2   :  { %v546_v1 = vld [vmem:[%s779_s0] sm:$0xff]   ;;  %v118_v4 = vsel %vm116_vm1, %v117_v3, 0  ;;  %v551_v9 = vld [vmem:[%s779_s0 + $0x28] sm:$0xff]   ;;  %v552_v10 = vld [vmem:[%s779_s0 + $0x30] sm:$0xff]  }
   0x3   :  { %520 = vmatprep.mubr.msk.bf16.mxu0 %vm90_vm2, %v546_v1  ;;  %v120_v5 = vand.u32 %v545_v0, %v118_v4  ;;  %v550_v8 = vld [vmem:[%s779_s0 + $0x20] sm:$0xff]  }
   0x4   :  { %528 = vmatprep.mubr.msk.bf16.mxu1 %vm90_vm2, %v550_v8 }
   0x5   :  { %518 = vmatprep.subr.bf16.mxu0 %v120_v5  ;;  %536 = vmatprep.subr.bf16.mxu1 %v120_v5 }
   0x6   :  { %519 = vmatpush3.bf16.msra.mxu0 %v120_v5  ;;  %537 = vmatpush3.bf16.msra.mxu1 %v120_v5 }
   0x7   :  { %12 = vsyncpa [#allocation5], 0  ;;  %v549_v11 = vld [vmem:[%s779_s0 + $0x18] sm:$0xff]   ;;  %v625_v13 = vmov 0.0   ;;  %v412_v14 = vld [vmem:[%s781_s2] ss:$0 sm:$0xff] }
   0x8   :  { %v553_v12 = vld [vmem:[%s779_s0 + $0x38] sm:$0xff]   ;;  %303 = vst [vmem:[#allocation4] sm:$0x1] %v625_v13  ;;  %304 = vst [vmem:[#allocation6] sm:$0x1] %v625_v13  ;;  %s626_s0 = smov [#allocation2]  }
   0x9   :  { %521 = vmatmul.mubr.msk.bf16.vlgmr.msra.gmra.mrb[0].mxu0 %vm90_vm2, %v547_v6  ;;  %529 = vmatmul.mubr.msk.bf16.vlgmr.msra.gmra.mrb[0].mxu1 %vm90_vm2, %v551_v9  ;;  %s374_s2 = sshll.u32 %s626_s0, 4  ;;  %s375_s2 = int_to_ptr.vmem [resolvable:$true] %s374_s2 }
   0xa   :  { %524 = vmatprep.mubr.msk.bf16.mxu0 %vm90_vm2, %v548_v7  ;;  %532 = vmatprep.mubr.msk.bf16.mxu1 %vm90_vm2, %v552_v10  ;;  %s554_s12 = scalar_lea.vmem %s375_s2, 1024  ;;  %p559_p1 = scmp.lt.s32.totalorder %s375_s2, %s375_s2 }
   0xb   :  { %p555_p0 = scmp.ne.s32.totalorder %s375_s2, %s554_s12  ;;  %p560_p2 = scmp.lt.s32.totalorder %s554_s12, %s554_s12 }
   0xd   :  { %p561_p3 = por %p560_p2, %p559_p1 }
   0xf   :  { %p562_p4 = pnand %p561_p3, %p555_p0 }
  0x11   :  { %525 = vmatmul.mubr.msk.bf16.gmra.mrb[4].mxu0 %vm90_vm2, %v549_v11  ;;  %533 = vmatmul.mubr.msk.bf16.gmra.mrb[4].mxu1 %vm90_vm2, %v553_v12 }
  0xdc   :  { %v522_v15 = vpop.f32.mrb[0].mxu0  ;;  %v530_v16 = vpop.f32.mrb[0].mxu1 }
  0xdd   :  { %v156_v17 = vpop.f32.mrb[1].mxu0  ;;  %v699_v18 = vadd.f32 %v530_v16, %v412_v14  ;;  %v188_v19 = vpop.f32.mrb[1].mxu1  ;;  %v165_v24 = vadd.f32 %v522_v15, %v412_v14 }
  0xde   :  { %v157_v20 = vadd.f32 %v412_v14, %v156_v17  ;;  %v523_v21 = vpop.f32.mrb[2].mxu0  ;;  %v701_v22 = vadd.f32 %v412_v14, %v188_v19  ;;  %v531_v23 = vpop.f32.mrb[2].mxu1 }
  0xdf   :  { %v168_v25 = vadd.f32 %v523_v21, %v412_v14  ;;  %v159_v26 = vpop.f32.mrb[3].mxu0  ;;  %v703_v27 = vadd.f32 %v531_v23, %v412_v14  ;;  %v191_v28 = vpop.f32.mrb[3].mxu1  ;;  %v332_v38 = vmul.f32 %v165_v24, %v165_v24 }
  0xe0   :  { %v160_v29 = vadd.f32 %v412_v14, %v159_v26  ;;  %v705_v30 = vadd.f32 %v412_v14, %v191_v28  ;;  %v330_v31 = vmul.f32 %v157_v20, %v157_v20  ;;  %v338_v12 = vmul.f32 %v701_v22, %v701_v22 }
  0xe1   :  { %v470_v32 = vpack.c.bf16 %v168_v25, %v165_v24  ;;  %v490_v33 = vpack.c.bf16 %v703_v27, %v699_v18  ;;  %v333_v46 = vmul.f32 %v168_v25, %v168_v25 }
  0xe2   :  { %v465_v34 = vpack.c.bf16 %v160_v29, %v157_v20  ;;  %v306_v35 = vadd.f32 %v160_v29, %v157_v20  ;;  %v331_v36 = vmul.f32 %v160_v29, %v160_v29  ;;  %v485_v37 = vpack.c.bf16 %v705_v30, %v701_v22 }
  0xe3   :  { %502 = vst [vmem:[#allocation2 + $0x8] sm:$0xff] %v470_v32   ;;  %506 = vst [vmem:[#allocation2 + $0x28] sm:$0xff] %v490_v33  }
  0xe4   :  { %466 = vst [vmem:[#allocation2] sm:$0xff] %v465_v34   ;;  %v307_v39 = vadd.f32 %v306_v35, %v165_v24  ;;  %v346_v40 = vadd.f32 %v331_v36, %v330_v31  ;;  %v526_v41 = vpop.f32.mrb[4].mxu0  ;;  %505 = vst [vmem:[#allocation2 + $0x20] sm:$0xff] %v485_v37   ;;  %v534_v42 = vpop.f32.mrb[4].mxu1 }
  0xe5   :  { %v172_v43 = vpop.f32.mrb[5].mxu0  ;;  %v711_v44 = vadd.f32 %v534_v42, %v412_v14  ;;  %v204_v45 = vpop.f32.mrb[5].mxu1  ;;  %v181_v52 = vadd.f32 %v526_v41, %v412_v14 }
  0xe6   :  { %v347_v47 = vadd.f32 %v346_v40, %v332_v38  ;;  %v173_v48 = vadd.f32 %v412_v14, %v172_v43  ;;  %v308_v49 = vadd.f32 %v307_v39, %v168_v25  ;;  %v527_v50 = vpop.f32.mrb[6].mxu0  ;;  %v535_v51 = vpop.f32.mrb[6].mxu1  ;;  %v205_v62 = vadd.f32 %v412_v14, %v204_v45 }
  0xe7   :  { %v184_v53 = vadd.f32 %v527_v50, %v412_v14  ;;  %v175_v54 = vpop.f32.mrb[7].mxu0  ;;  %v713_v55 = vadd.f32 %v535_v51, %v412_v14  ;;  %v207_v56 = vpop.f32.mrb[7].mxu1  ;;  %v336_v5 = vmul.f32 %v181_v52, %v181_v52 }
  0xe8   :  { %v309_v57 = vadd.f32 %v308_v49, %v173_v48  ;;  %v334_v58 = vmul.f32 %v173_v48, %v173_v48  ;;  %v348_v59 = vadd.f32 %v347_v47, %v333_v46  ;;  %v176_v60 = vadd.f32 %v412_v14, %v175_v54 }
  0xe9   :  { %v480_v61 = vpack.c.bf16 %v184_v53, %v181_v52  ;;  %v500_v63 = vpack.c.bf16 %v713_v55, %v711_v44  ;;  %v208_v4 = vadd.f32 %v412_v14, %v207_v56  ;;  %v337_v9 = vmul.f32 %v184_v53, %v184_v53 }
  0xea   :  { %v349_v0 = vadd.f32 %v348_v59, %v334_v58  ;;  %v475_v1 = vpack.c.bf16 %v176_v60, %v173_v48  ;;  %v310_v2 = vadd.f32 %v309_v57, %v176_v60  ;;  %v335_v3 = vmul.f32 %v176_v60, %v176_v60 }
  0xeb   :  { %504 = vst [vmem:[#allocation2 + $0x18] sm:$0xff] %v480_v61   ;;  %508 = vst [vmem:[#allocation2 + $0x38] sm:$0xff] %v500_v63   ;;  %v495_v8 = vpack.c.bf16 %v208_v4, %v205_v62 }
  0xec   :  { %503 = vst [vmem:[#allocation2 + $0x10] sm:$0xff] %v475_v1   ;;  %v311_v6 = vadd.f32 %v310_v2, %v181_v52  ;;  %v350_v7 = vadd.f32 %v349_v0, %v335_v3 }
  0xed   :  { %507 = vst [vmem:[#allocation2 + $0x30] sm:$0xff] %v495_v8  }
  0xee   :  { %v351_v10 = vadd.f32 %v350_v7, %v336_v5  ;;  %v312_v11 = vadd.f32 %v311_v6, %v184_v53 }
  0xf0   :  { %v313_v13 = vadd.f32 %v312_v11, %v701_v22  ;;  %v352_v15 = vadd.f32 %v351_v10, %v337_v9 }
  0xf1   :  { %565 = shalt.err (!%p562_p4)
}
  0xf2   :  { %s566_s15 = scalar_lea.hbm %s782_s3, 1024 }
  0xf3   :  { %p567_p5 = scmp.ne.s32.totalorder %s782_s3, %s566_s15  ;;  %p570_p6 = scmp.lt.u32.totalorder %s566_s15, %s782_s3 }
  0xf5   :  { %p572_p7 = pnand %p570_p6, %p567_p5 }
  0xf7   :  { %575 = shalt.err (!%p572_p7)
}
  0xf8   :  { %s627_s20 = smov 64   ;;  %s628_s21 = smov 4   ;;  %v353_v14 = vadd.f32 %v352_v15, %v338_v12  ;;  %v314_v16 = vadd.f32 %v313_v13, %v705_v30  ;;  %v339_v17 = vmul.f32 %v705_v30, %v705_v30  ;;  %v340_v19 = vmul.f32 %v699_v18, %v699_v18  ;;  %v305_v47 = vld [vmem:[#allocation4] sm:$0x1]  ;;  %v329_v49 = vld [vmem:[#allocation6] sm:$0x1] }
  0xf9   :  { %380 = dma.vmem_to_hbm [thread:$0]  %s375_s2, 1024, %s782_s3, [#allocation3], %s627_s20, %s627_s20, %s628_s21   ;;  %v341_v22 = vmul.f32 %v703_v27, %v703_v27  ;;  %v342_v25 = vmul.f32 %v205_v62, %v205_v62  ;;  %v343_v32 = vmul.f32 %v208_v4, %v208_v4  ;;  %v344_v30 = vmul.f32 %v711_v44, %v711_v44 }
  0xfa   :  { %v315_v20 = vadd.f32 %v314_v16, %v699_v18  ;;  %v354_v21 = vadd.f32 %v353_v14, %v339_v17  ;;  %v345_v18 = vmul.f32 %v713_v55, %v713_v55  ;;  %s629_s3 = smov [#allocation4]   ;;  %s630_s25 = smov [#allocation6]  }
  0xfb   :  { %s387_s24 = sshll.u32 %s629_s3, 4  ;;  %s397_s1 = sshll.u32 %s630_s25, 4  ;;  %s388_s24 = int_to_ptr.vmem [resolvable:$true] %s387_s24  ;;  %s747_s1 = int_to_ptr.vmem [resolvable:$true] %s397_s1 }
  0xfc   :  { %v355_v23 = vadd.f32 %v354_v21, %v340_v19  ;;  %v316_v24 = vadd.f32 %v315_v20, %v703_v27  ;;  %s576_s26 = scalar_lea.vmem %s388_s24, 16  ;;  %s580_s27 = scalar_lea.vmem %s388_s24, 32 }
  0xfd   :  { %p577_p8 = scmp.ne.s32.totalorder %s388_s24, %s576_s26  ;;  %p581_p9 = scmp.lt.s32.totalorder %s388_s24, %s388_s24 }
  0xfe   :  { %v317_v26 = vadd.f32 %v316_v24, %v205_v62  ;;  %v356_v28 = vadd.f32 %v355_v23, %v341_v22  ;;  %p582_p10 = scmp.lt.s32.totalorder %s580_s27, %s576_s26 }
 0x100   :  { %v357_v29 = vadd.f32 %v356_v28, %v342_v25  ;;  %v318_v31 = vadd.f32 %v317_v26, %v208_v4  ;;  %p583_p11 = por %p582_p10, %p581_p9 }
 0x102   :  { %v319_v33 = vadd.f32 %v318_v31, %v711_v44  ;;  %v358_v34 = vadd.f32 %v357_v29, %v343_v32  ;;  %p584_p12 = pnand %p583_p11, %p577_p8 }
 0x104   :  { %v320_v35 = vadd.f32 %v319_v33, %v713_v55  ;;  %v359_v36 = vadd.f32 %v358_v34, %v344_v30 }
 0x106   :  { %v321_v37 = vrot.slane %v320_v35, 4  ;;  %v360_v27 = vadd.f32 %v359_v36, %v345_v18 }
 0x108   :  { %v322_v38 = vadd.f32 %v321_v37, %v320_v35  ;;  %v361_v39 = vrot.slane %v360_v27, 4 }
 0x10a   :  { %v323_v40 = vrot.slane %v322_v38, 2  ;;  %v362_v41 = vadd.f32 %v361_v39, %v360_v27 }
 0x10c   :  { %v324_v42 = vadd.f32 %v323_v40, %v322_v38  ;;  %v363_v43 = vrot.slane %v362_v41, 2 }
 0x10e   :  { %v325_v45 = vrot.slane %v324_v42, 1  ;;  %v364_v46 = vadd.f32 %v363_v43, %v362_v41 }
 0x110   :  { %v326_v44 = vadd.f32 %v325_v45, %v324_v42  ;;  %v365_v48 = vrot.slane %v364_v46, 1 }
 0x112   :  { %v327_v50 = vadd.f32 %v326_v44, %v305_v47  ;;  %v366_v51 = vadd.f32 %v365_v48, %v364_v46 }
 0x114   :  { %328 = vst [vmem:[#allocation4] sm:$0x1] %v327_v50  ;;  %v367_v52 = vadd.f32 %v366_v51, %v329_v49 }
 0x115   :  { %587 = shalt.err (!%p584_p12)
}
 0x116   :  { %s588_s30 = scalar_lea.hbm %s783_s4, 16 }
 0x117   :  { %p589_p13 = scmp.ne.s32.totalorder %s783_s4, %s588_s30  ;;  %p592_p0 = scmp.lt.u32.totalorder %s588_s30, %s783_s4 }
 0x119   :  { %p594_p1 = pnand %p592_p0, %p589_p13 }
 0x11b   :  { %597 = shalt.err (!%p594_p1)
}
 0x11c   :  { %390 = dma.vmem_to_hbm [thread:$0]  %s388_s24, 16, %s783_s4, [#allocation5]   ;;  %368 = vst [vmem:[#allocation6] sm:$0x1] %v367_v52 }
 0x11d   :  { %s598_s0 = scalar_lea.vmem %s747_s1, 16  ;;  %s602_s2 = scalar_lea.vmem %s747_s1, 32 }
 0x11e   :  { %p599_p2 = scmp.ne.s32.totalorder %s747_s1, %s598_s0  ;;  %p603_p3 = scmp.lt.s32.totalorder %s747_s1, %s747_s1 }
 0x11f   :  { %p604_p4 = scmp.lt.s32.totalorder %s602_s2, %s598_s0 }
 0x121   :  { %p605_p5 = por %p604_p4, %p603_p3 }
 0x123   :  { %p606_p6 = pnand %p605_p5, %p599_p2 }
 0x125   :  { %609 = shalt.err (!%p606_p6)
}
 0x126   :  { %s610_s14 = scalar_lea.hbm %s784_s5, 16 }
 0x127   :  { %p611_p7 = scmp.ne.s32.totalorder %s784_s5, %s610_s14  ;;  %p614_p8 = scmp.lt.u32.totalorder %s610_s14, %s784_s5 }
 0x129   :  { %p616_p9 = pnand %p614_p8, %p611_p7 }
 0x12b   :  { %619 = shalt.err (!%p616_p9)
}
 0x12c   :  { %400 = dma.vmem_to_hbm [thread:$0]  %s747_s1, 16, %s784_s5, [#allocation5]  }
 0x12d   :  { %620 = dma.done.wait [#allocation3], 1024  }
 0x12e   :  { %621 = vsyncadd [#allocation3], 4294966272 }
 0x12f   :  { %622 = dma.done.wait [#allocation5], 32  }
 0x130   :  { %623 = vsyncadd [#allocation5], 4294967264 }
 0x131   :  { %410 = vsyncpa [#allocation3], 1 }
 0x132   :  { %411 = vsyncpa [#allocation5], 1 }

</bundles_post_ra>
